<compile_context>
chip_gen: v6e
topology: v6e:2x2x1
jax: 0.10.0
libtpu: 0.0.40
codegen_flags: <defaults>
</compile_context>

<pallas_src>
import jax
import jax.numpy as jnp
import numpy as np
from jax.experimental import pallas as pl
from jax.experimental.pallas import tpu as pltpu


# --------------------------------------------------------------------------- #
# Kernel 1: emb = relu(A_hat @ XW)          (first GCN layer propagation)      #
#   XW = X @ W1 is precomputed (hoisted) in the wrapper and streamed in bf16.  #
#   grid = (row tiles of A, K tiles of A); K axis last (reduction).            #
# --------------------------------------------------------------------------- #
def _prop1_kernel(a_ref, xw_ref, emb_ref, acc_ref):
    k = pl.program_id(1)

    @pl.when(k == 0)
    def _():
        acc_ref[...] = jnp.zeros_like(acc_ref)

    acc_ref[...] += jnp.dot(a_ref[...], xw_ref[...],
                            preferred_element_type=jnp.float32)

    @pl.when(k == pl.num_programs(1) - 1)
    def _():
        emb_ref[...] = jnp.maximum(acc_ref[...], 0.0).astype(emb_ref.dtype)


# --------------------------------------------------------------------------- #
# Kernel 2: fused second propagation (packed base|ex) + MLP explainer          #
#   pre    = [X | emb] @ W_cat     (W_cat columns: [W2 on emb | Wgx/Wge])      #
#   packed = A_hat @ pre           (packed[:, :C] = base, packed[:, C:2C] = ex)#
#   mlp    = relu(X @ Wm1) @ Wm2   (A-free branch, epilogue only)              #
# --------------------------------------------------------------------------- #
def _prop2_kernel(a_ref, xe_ref, xi_ref, wcat_ref, wm1_ref, wm2_ref,
                  packed_ref, mlp_ref, acc_ref):
    k = pl.program_id(1)

    @pl.when(k == 0)
    def _():
        acc_ref[...] = jnp.zeros_like(acc_ref)

    pre = jnp.dot(xe_ref[...], wcat_ref[...], preferred_element_type=jnp.float32)
    acc_ref[...] += jnp.dot(a_ref[...], pre.astype(a_ref.dtype),
                            preferred_element_type=jnp.float32)

    @pl.when(k == pl.num_programs(1) - 1)
    def _():
        packed_ref[...] = acc_ref[...]
        mh = jnp.maximum(
            jnp.dot(xi_ref[...], wm1_ref[...], preferred_element_type=jnp.float32),
            0.0)
        mlp_ref[...] = jnp.dot(mh.astype(wm2_ref.dtype), wm2_ref[...],
                               preferred_element_type=jnp.float32)


# --------------------------------------------------------------------------- #
# Wrapper                                                                      #
# --------------------------------------------------------------------------- #
def _round_up(v, m):
    return ((v + m - 1) // m) * m


def _pad_to(x, shape):
    pads = [(0, t - s) for s, t in zip(x.shape, shape)]
    return jnp.pad(x, pads)


def all_online_kg_forward(a_hat, x, params):
    """Fused AllOnlineKG forward. Returns (base, ex, mlp, t, p_labels)."""
    n, f = x.shape
    h = params["w1"].shape[1]
    c = params["w2"].shape[1]

    LANE = 128
    TILE = 1024                          # bf16 1024x1024 A tile = 2 MiB/buffer
    f32, bf16 = jnp.float32, jnp.bfloat16

    n_p = _round_up(n, LANE)
    if n_p > TILE:
        n_p = _round_up(n, TILE)
        tm = tk = TILE                   # grid_m >= 2 automatically
    else:
        tk = n_p
        tm = n_p // 2                    # >=2 row tiles so v7x's 2nd TC has work
    f_p = _round_up(f, 8)
    h_p = _round_up(h, 8)
    w_pre = _round_up(2 * c, LANE)       # base|ex packed into ONE lane group (C<=64)
    c_mlp = _round_up(c, LANE)           # lane-dense mlp output

    grid = (n_p // tm, n_p // tk)
    grid_m, grid_k = grid

    # ---- operand prep (padding is zero => mathematically exact) --------------
    x_pad_f32 = _pad_to(x.astype(f32), (n_p, f_p))
    a_bf = _pad_to(a_hat.astype(f32), (n_p, n_p)).astype(bf16)
    x_bf = x_pad_f32.astype(bf16)

    # Hoisted first-layer projection (computed once, f32, streamed as bf16).
    w1_p = _pad_to(params["w1"].astype(f32), (f_p, h_p))
    xw_bf = jnp.dot(x_pad_f32, w1_p).astype(bf16)

    # Stacked weight for the merged kernel-2 projection: rows = [X | emb] dims,
    # cols = [base slot (W2) | ex slot (Wgx on X rows, Wge on emb rows)].
    w_cat = jnp.zeros((f_p + h_p, w_pre), f32)
    w_cat = w_cat.at[f_p:f_p + h, 0:c].set(params["w2"].astype(f32))
    w_cat = w_cat.at[0:f, c:2 * c].set(params["wgx"].astype(f32))
    w_cat = w_cat.at[f_p:f_p + h, c:2 * c].set(params["wge"].astype(f32))
    w_cat_bf = w_cat.astype(bf16)

    wm1_bf = _pad_to(params["wm1"].astype(f32), (f_p, h_p)).astype(bf16)
    wm2_bf = _pad_to(params["wm2"].astype(f32), (h_p, c_mlp)).astype(bf16)
    tw = params["tw"].astype(f32)

    cparams = pltpu.CompilerParams(
        dimension_semantics=("parallel", "arbitrary"),   # rows split across v7x TCs
        vmem_limit_bytes=32 * 1024 * 1024)               # stays < v7x 64 MiB/TC

    # ---- kernel 1: emb = relu(A @ XW) -----------------------------------------
    cost1 = pl.CostEstimate(
        flops=int(2 * n_p * n_p * h_p),
        transcendentals=0,
        bytes_accessed=int(2 * n_p * n_p + 2 * grid_m * n_p * h_p + 2 * n_p * h_p))

    emb_bf = pl.pallas_call(
        _prop1_kernel,
        out_shape=jax.ShapeDtypeStruct((n_p, h_p), bf16),
        grid=grid,
        in_specs=[
            pl.BlockSpec((tm, tk), lambda i, k: (i, k)),    # A_hat tile (pipelined)
            pl.BlockSpec((tk, h_p), lambda i, k: (k, 0)),   # XW rows matching A cols
        ],
        out_specs=pl.BlockSpec((tm, h_p), lambda i, k: (i, 0)),
        scratch_shapes=[pltpu.VMEM((tm, h_p), f32)],
        compiler_params=cparams,
        cost_estimate=cost1,
    )(a_bf, xw_bf)

    # [X | emb] streamed as one merged k-operand (one matmul per step in kernel 2).
    xe_bf = jnp.concatenate([x_bf, emb_bf], axis=1)         # (n_p, f_p + h_p)

    # ---- kernel 2: packed = A @ ([X|emb] @ W_cat), mlp branch -----------------
    cost2 = pl.CostEstimate(
        flops=int(2 * n_p * n_p * w_pre
                  + grid_m * 2 * n_p * (f_p + h_p) * w_pre
                  + 2 * n_p * f_p * h_p + 2 * n_p * h_p * c_mlp),
        transcendentals=0,
        bytes_accessed=int(2 * n_p * n_p
                           + 2 * grid_m * n_p * (f_p + h_p)
                           + 2 * n_p * f_p
                           + 4 * n_p * (w_pre + c_mlp)
                           + 2 * ((f_p + h_p) * w_pre + f_p * h_p + h_p * c_mlp)))

    packed_p, mlp_p = pl.pallas_call(
        _prop2_kernel,
        out_shape=(jax.ShapeDtypeStruct((n_p, w_pre), f32),
                   jax.ShapeDtypeStruct((n_p, c_mlp), f32)),
        grid=grid,
        in_specs=[
            pl.BlockSpec((tm, tk), lambda i, k: (i, k)),              # A_hat tile
            pl.BlockSpec((tk, f_p + h_p), lambda i, k: (k, 0)),       # [X|emb] k rows
            pl.BlockSpec((tm, f_p), lambda i, k: (i, 0)),             # X rows (MLP)
            pl.BlockSpec((f_p + h_p, w_pre), lambda i, k: (0, 0)),    # W_cat (resident)
            pl.BlockSpec((f_p, h_p), lambda i, k: (0, 0)),            # Wm1
            pl.BlockSpec((h_p, c_mlp), lambda i, k: (0, 0)),          # Wm2
        ],
        out_specs=(pl.BlockSpec((tm, w_pre), lambda i, k: (i, 0)),
                   pl.BlockSpec((tm, c_mlp), lambda i, k: (i, 0))),
        scratch_shapes=[pltpu.VMEM((tm, w_pre), f32)],
        compiler_params=cparams,
        cost_estimate=cost2,
    )(a_bf, xe_bf, x_bf, w_cat_bf, wm1_bf, wm2_bf)

    # Un-pack logits + teacher mix (O(N*C) elementwise, fuses with the slicing).
    base = packed_p[:n, 0:c]
    ex = packed_p[:n, c:2 * c]
    mlp = mlp_p[:n, :c]
    t = tw[0] * base + tw[1] * ex + tw[2] * mlp
    p_labels = None   # graph_student_name != 'lpa' branch
    return base, ex, mlp, t, p_labels


# --------------------------------------------------------------------------- #
# Reference + test                                                             #
# --------------------------------------------------------------------------- #
def _reference(a_hat, x, params):
    dot = lambda a, b: jnp.dot(a, b, precision=jax.lax.Precision.HIGHEST)
    emb = jnp.maximum(dot(a_hat, dot(x, params["w1"])), 0.0)
    base = dot(a_hat, dot(emb, params["w2"]))
    ex = dot(a_hat, dot(x, params["wgx"]) + dot(emb, params["wge"]))
    mlp = dot(jnp.maximum(dot(x, params["wm1"]), 0.0), params["wm2"])
    tw = params["tw"]
    t = tw[0] * base + tw[1] * ex + tw[2] * mlp
    return base, ex, mlp, t


def _normalized_adjacency(key, n):
    a = (jax.random.uniform(key, (n, n)) < 0.2).astype(jnp.float32)
    a = jnp.maximum(a, a.T)
    a = a * (1.0 - jnp.eye(n)) + jnp.eye(n)
    deg = jnp.sum(a, axis=1)
    d_inv_sqrt = 1.0 / jnp.sqrt(deg)
    return (a * d_inv_sqrt[:, None]) * d_inv_sqrt[None, :]


if __name__ == "__main__":
    N, F, H, C = 16, 32, 32, 8  # nodes, feature dim, hidden dim, num classes

    key = jax.random.PRNGKey(0)
    k_adj, k_x, k1, k2, k3, k4, k5, k6 = jax.random.split(key, 8)

    a_hat = _normalized_adjacency(k_adj, N)
    x = jax.random.normal(k_x, (N, F), dtype=jnp.float32)

    def glorot(k, shape):
        scale = jnp.sqrt(2.0 / (shape[0] + shape[1]))
        return (jax.random.normal(k, shape) * scale).astype(jnp.float32)

    tw_raw = jnp.array([0.5, 0.2, 0.3], dtype=jnp.float32)
    params = {
        "w1": glorot(k1, (F, H)),
        "w2": glorot(k2, (H, C)),
        "wgx": glorot(k3, (F, C)),
        "wge": glorot(k4, (H, C)),
        "wm1": glorot(k5, (F, H)),
        "wm2": glorot(k6, (H, C)),
        "tw": jax.nn.softmax(tw_raw),  # teacher mixing weights
    }

    base, ex, mlp, t, p_labels = all_online_kg_forward(a_hat, x, params)
    jax.block_until_ready((base, ex, mlp, t))

    rb, re, rm, rt = _reference(a_hat, x, params)
    # Tolerance documents bf16 operand streaming (A/X/emb/weights) with f32
    # MXU accumulation; normalized-adjacency values in [0,1] keep errors small.
    np.testing.assert_allclose(np.asarray(base), np.asarray(rb), rtol=3e-2, atol=3e-2)
    np.testing.assert_allclose(np.asarray(ex), np.asarray(re), rtol=3e-2, atol=3e-2)
    np.testing.assert_allclose(np.asarray(mlp), np.asarray(rm), rtol=3e-2, atol=3e-2)
    np.testing.assert_allclose(np.asarray(t), np.asarray(rt), rtol=3e-2, atol=3e-2)
    assert p_labels is None

    print("KERNEL_OK")
</pallas_src>

<mosaic_0001>
module attributes {stable_mosaic.version = 11 : i64} {
  func.func @_prop1_kernel(%arg0: i32, %arg1: i32, %arg2: memref<64x128xbf16, #tpu.memory_space<vmem>>, %arg3: memref<128x32xbf16, #tpu.memory_space<vmem>>, %arg4: memref<64x32xbf16, #tpu.memory_space<vmem>>, %arg5: memref<64x32xf32, #tpu.memory_space<vmem>>) attributes {dimension_semantics = [#tpu.dimension_semantics<parallel>, #tpu.dimension_semantics<arbitrary>], iteration_bounds = array<i64: 2, 1>, scalar_prefetch = 0 : i64, scratch_operands = 1 : i64, tpu.core_type = #tpu.core_type<tc>, window_params = [{transform_indices = @transform_0, window_bounds = array<i64: 64, 128>}, {transform_indices = @transform_1, window_bounds = array<i64: 128, 32>}, {transform_indices = @transform_2, window_bounds = array<i64: 64, 32>}]} {
    %c0_i32 = arith.constant 0 : i32
    %0 = arith.cmpi eq, %arg1, %c0_i32 : i32
    %1 = arith.extui %0 : i1 to i32
    %c0_i32_0 = arith.constant 0 : i32
    %2 = arith.cmpi ne, %1, %c0_i32_0 : i32
    scf.if %2 {
      %cst_10 = arith.constant 0.000000e+00 : f32
      %12 = vector.broadcast %cst_10 : f32 to vector<64x32xf32>
      %c0_11 = arith.constant 0 : index
      %c0_12 = arith.constant 0 : index
      %13 = vector.load %arg5[%c0_11, %c0_12] : memref<64x32xf32, #tpu.memory_space<vmem>>, vector<64x32xf32>
      tpu.vector_store %arg5[%c0_11, %c0_12], %12 {strides = array<i32>} : memref<64x32xf32, #tpu.memory_space<vmem>>, vector<64x32xf32>,
    } else {
    }
    %c0 = arith.constant 0 : index
    %c0_1 = arith.constant 0 : index
    %3 = vector.load %arg5[%c0, %c0_1] : memref<64x32xf32, #tpu.memory_space<vmem>>, vector<64x32xf32>
    %c0_2 = arith.constant 0 : index
    %c0_3 = arith.constant 0 : index
    %4 = vector.load %arg2[%c0_2, %c0_3] : memref<64x128xbf16, #tpu.memory_space<vmem>>, vector<64x128xbf16>
    %c0_4 = arith.constant 0 : index
    %c0_5 = arith.constant 0 : index
    %5 = vector.load %arg3[%c0_4, %c0_5] : memref<128x32xbf16, #tpu.memory_space<vmem>>, vector<128x32xbf16>
    %cst = arith.constant dense<0.000000e+00> : vector<64x32xf32>
    %6 = tpu.matmul %4, %5, %cst {dimension_numbers = #tpu.dot_dimension_numbers<[1], [0], [0], [1], [0, 0, 1, 1], [], []>} : vector<64x128xbf16>, vector<128x32xbf16>, vector<64x32xf32> -> vector<64x32xf32>
    %7 = arith.addf %3, %6 : vector<64x32xf32>
    %c0_6 = arith.constant 0 : index
    %c0_7 = arith.constant 0 : index
    %8 = vector.load %arg5[%c0_6, %c0_7] : memref<64x32xf32, #tpu.memory_space<vmem>>, vector<64x32xf32>
    tpu.vector_store %arg5[%c0_6, %c0_7], %7 {strides = array<i32>} : memref<64x32xf32, #tpu.memory_space<vmem>>, vector<64x32xf32>,
    %c0_i32_8 = arith.constant 0 : i32
    %9 = arith.cmpi eq, %arg1, %c0_i32_8 : i32
    %10 = arith.extui %9 : i1 to i32
    %c0_i32_9 = arith.constant 0 : i32
    %11 = arith.cmpi ne, %10, %c0_i32_9 : i32
    scf.if %11 {
      %c0_10 = arith.constant 0 : index
      %c0_11 = arith.constant 0 : index
      %12 = vector.load %arg5[%c0_10, %c0_11] : memref<64x32xf32, #tpu.memory_space<vmem>>, vector<64x32xf32>
      %cst_12 = arith.constant 0.000000e+00 : f32
      %13 = vector.broadcast %cst_12 : f32 to vector<64x32xf32>
      %14 = arith.maximumf %12, %13 : vector<64x32xf32>
      %15 = arith.truncf %14 : vector<64x32xf32> to vector<64x32xbf16>
      %c0_13 = arith.constant 0 : index
      %c0_14 = arith.constant 0 : index
      %16 = vector.load %arg4[%c0_13, %c0_14] : memref<64x32xbf16, #tpu.memory_space<vmem>>, vector<64x32xbf16>
      tpu.vector_store %arg4[%c0_13, %c0_14], %15 {strides = array<i32>} : memref<64x32xbf16, #tpu.memory_space<vmem>>, vector<64x32xbf16>,
    } else {
    }
    return
  }
  func.func @transform_0(%arg0: i32, %arg1: i32) -> (i32, i32) {
    %c0_i32 = arith.constant 0 : i32
    return %arg0, %arg1 : i32, i32
  }
  func.func @transform_1(%arg0: i32, %arg1: i32) -> (i32, i32) {
    %c0_i32 = arith.constant 0 : i32
    %c0_i32_0 = arith.constant 0 : i32
    return %arg1, %c0_i32 : i32, i32
  }
  func.func @transform_2(%arg0: i32, %arg1: i32) -> (i32, i32) {
    %c0_i32 = arith.constant 0 : i32
    %c0_i32_0 = arith.constant 0 : i32
    return %arg0, %c0_i32 : i32, i32
  }
}

</mosaic_0001>

<bundles_post_ra>
// kernel: tpu_custom_call.1
= control target key start
LH: loop header
LB: loop body
LE: loop exit
PB: predicated region body
PF: predicated region fallthrough
CT: control target
= control target key end

     0   :  { %s704_s9 = smov 0   ;;  %s706_s10 = smov 0   ;;  %s798_s0 = inlined_call_operand.vmem [shape: bf16[128,128], index: 0, kind: input, shape index: {}]   ;;  %s799_s1 = inlined_call_operand.vmem [shape: bf16[128,32], index: 1, kind: input, shape index: {}]   ;;  %s800_s2 = inlined_call_operand.vmem [shape: bf16[128,32], index: 2, kind: output, shape index: {}]  }
   0x1   :  { %s708_s11 = smov 0  }
   0x2 LB: > { %s24_s12 = sadd.s32 1, %s682_s10  ;;  %p540_p0 = scmp.ge.s32.totalorder %s686_s11, 1  ;;  %s686_s11 = sphi %s708_s11, %s12_s11   ;;  %s682_s10 = sphi %s706_s10, %s802_s10   ;;  %s678_s9 = sphi %s704_s9, %s801_s9  }
   0x3   : > { %p26_p1 = scmp.ge.s32.totalorder %s24_s12, 2  ;;  %p141_p2 = scmp.lt.s32.totalorder %s686_s11, 3 }
   0x5   : > { %s804_s12 = smov (%p26_p1, %s24_s12), 0  ;;  %p142_p3 = pnand %p540_p0, %p141_p2 }
   0x6   : > { %s541_s15 = sshll.u32 (!%p142_p3), %s678_s9, 3 }
   0x7   : > { %145 = sbr.rel (%p142_p3) target bundleno = 260 (0x104), region = 28  ;;  %p172_p4 = scmp.lt.s32.totalorder (!%p142_p3), %s541_s15, 15 }
   0xc   : > { %v652_v0 = vld [vmem:[%s799_s1 + $0x38] sm:$0xff]   ;;  %v653_v1 = vld [vmem:[%s799_s1 + $0x30] sm:$0xff]   ;;  %vm197_vm0 = vcmask 261120   ;;  %s806_s15 = smov (!%p172_p4, %s541_s15), 15  ;;  %v654_v2 = vld [vmem:[%s799_s1 + $0x28] sm:$0xff]   ;;  %v688_v3 = vmov 0.0  }
   0xd   : > { %587 = vmatprep.subr.bf16.mxu0 %v652_v0  ;;  %611 = vmatprep.subr.bf16.mxu1 %v652_v0  ;;  %s542_s20 = sshll.u32 %s806_s15, 2  ;;  %200 = vst.msk [vmem:[#allocation2 + $0x10] sm:$0xff] %vm197_vm0, %v688_v3  ;;  %198 = vst.msk [vmem:[#allocation2] sm:$0xff] %vm197_vm0, %v688_v3  ;;  %v655_v4 = vld [vmem:[%s799_s1 + $0x20] sm:$0xff]   ;;  %v656_v7 = vld [vmem:[%s799_s1 + $0x18] sm:$0xff]   ;;  %vm443_vm1 = vcmask 257024  }
   0xe   : > { %588 = vmatpush3.bf16.msra.mxu0 %v652_v0  ;;  %619 = vmatpush3.bf16.msra.mxu1 %v652_v0  ;;  %199 = vst.msk [vmem:[#allocation2 + $0x8] sm:$0xff] %vm197_vm0, %v688_v3  ;;  %201 = vst.msk [vmem:[#allocation2 + $0x18] sm:$0xff] %vm197_vm0, %v688_v3  ;;  %s747_s23 = scalar_lea.vmem %s798_s0, %s542_s20  ;;  %v657_v8 = vld [vmem:[%s799_s1 + $0x10] sm:$0xff]   ;;  %v658_v9 = vld [vmem:[%s799_s1 + $0x8] sm:$0xff]   ;;  %s190_s8 = scalar_lea.vmem %s800_s2, %s542_s20 }
   0xf   : > { %589 = vmatprep.subr.bf16.mxu0 %v653_v1  ;;  %612 = vmatprep.subr.bf16.mxu1 %v653_v1  ;;  %202 = vst.msk [vmem:[#allocation2 + $0x20] sm:$0xff] %vm197_vm0, %v688_v3  ;;  %203 = vst.msk [vmem:[#allocation2 + $0x28] sm:$0xff] %vm197_vm0, %v688_v3  ;;  %v660_v5 = vld [vmem:[%s747_s23] sm:$0xff]   ;;  %v661_v6 = vld [vmem:[%s747_s23 + $0x10] sm:$0xff]  }
  0x10   : > { %204 = vst.msk [vmem:[#allocation2 + $0x30] sm:$0xff] %vm197_vm0, %v688_v3  ;;  %205 = vst.msk [vmem:[#allocation2 + $0x38] sm:$0xff] %vm197_vm0, %v688_v3  ;;  %603 = vmatprep.mubr.bf16.mxu0 %v660_v5  ;;  %607 = vmatprep.mubr.bf16.mxu1 %v661_v6  ;;  %v659_v10 = vld [vmem:[%s799_s1] sm:$0xff]   ;;  %v662_v11 = vld [vmem:[%s747_s23 + $0x8] sm:$0xff]  }
  0x11   : > { %v663_v12 = vld [vmem:[%s747_s23 + $0x18] sm:$0xff]  }
  0x12   : > { %590 = vmatpush3.bf16.msra.mxu0 %v653_v1  ;;  %620 = vmatpush3.bf16.msra.mxu1 %v653_v1 }
  0x13   : > { %591 = vmatprep.subr.bf16.mxu0 %v654_v2  ;;  %613 = vmatprep.subr.bf16.mxu1 %v654_v2 }
  0x14   : > { %v208_v13 = vld [vmem:[#allocation2 + $0x10] sm:$0xff]  ;;  %v206_v17 = vld [vmem:[#allocation2] sm:$0xff] }
  0x15   : > { %v209_v23 = vld [vmem:[#allocation2 + $0x18] sm:$0xff]  ;;  %v207_v29 = vld [vmem:[#allocation2 + $0x8] sm:$0xff] }
  0x16   : > { %592 = vmatpush3.bf16.msra.mxu0 %v654_v2  ;;  %621 = vmatpush3.bf16.msra.mxu1 %v654_v2  ;;  %v210_v18 = vld [vmem:[#allocation2 + $0x20] sm:$0xff]  ;;  %v211_v30 = vld [vmem:[#allocation2 + $0x28] sm:$0xff] }
  0x17   : > { %593 = vmatprep.subr.bf16.mxu0 %v655_v4  ;;  %614 = vmatprep.subr.bf16.mxu1 %v655_v4  ;;  %v212_v14 = vld [vmem:[#allocation2 + $0x30] sm:$0xff]  ;;  %v213_v24 = vld [vmem:[#allocation2 + $0x38] sm:$0xff] }
  0x1a   : > { %594 = vmatpush3.bf16.msra.mxu0 %v655_v4  ;;  %622 = vmatpush3.bf16.msra.mxu1 %v655_v4 }
  0x1b   : > { %595 = vmatprep.subr.bf16.mxu0 %v656_v7  ;;  %615 = vmatprep.subr.bf16.mxu1 %v656_v7 }
  0x1e   : > { %596 = vmatpush3.bf16.msra.mxu0 %v656_v7  ;;  %623 = vmatpush3.bf16.msra.mxu1 %v656_v7 }
  0x1f   : > { %597 = vmatprep.subr.bf16.mxu0 %v657_v8  ;;  %616 = vmatprep.subr.bf16.mxu1 %v657_v8 }
  0x22   : > { %598 = vmatpush3.bf16.msra.mxu0 %v657_v8  ;;  %624 = vmatpush3.bf16.msra.mxu1 %v657_v8 }
  0x23   : > { %599 = vmatprep.subr.bf16.mxu0 %v658_v9  ;;  %617 = vmatprep.subr.bf16.mxu1 %v658_v9 }
  0x26   : > { %600 = vmatpush3.bf16.msra.mxu0 %v658_v9  ;;  %625 = vmatpush3.bf16.msra.mxu1 %v658_v9 }
  0x27   : > { %601 = vmatprep.subr.bf16.mxu0 %v659_v10  ;;  %618 = vmatprep.subr.bf16.mxu1 %v659_v10 }
  0x2a   : > { %602 = vmatpush3.bf16.msra.mxu0 %v659_v10  ;;  %626 = vmatpush3.bf16.msra.mxu1 %v659_v10 }
  0x2d   : > { %604 = vmatmul.mubr.bf16.vlgmr.msra.gmra.mxu0 %v662_v11  ;;  %608 = vmatmul.mubr.bf16.vlgmr.msra.gmra.mxu1 %v663_v12 }
  0xed   : > { %v605_v15 = vpop.f32.mrf.mxu0  ;;  %v609_v16 = vpop.f32.mrf.mxu1 }
  0xee   : > { %v377_v19 = vadd.f32 %v605_v15, %v208_v13  ;;  %v381_v20 = vadd.f32 %v609_v16, %v212_v14 }
  0xef   : > { %v344_v21 = vpop.f32.mrf.mxu0  ;;  %v360_v22 = vpop.f32.mrf.mxu1 }
  0xf0   : > { %386 = vst.msk [vmem:[#allocation2 + $0x10] sm:$0xff] %vm197_vm0, %v377_v19  ;;  %390 = vst.msk [vmem:[#allocation2 + $0x30] sm:$0xff] %vm197_vm0, %v381_v20  ;;  %v375_v25 = vadd.f32 %v344_v21, %v206_v17  ;;  %v379_v26 = vadd.f32 %v360_v22, %v210_v18 }
  0xf1   : > { %v606_v27 = vpop.f32.mrf.mxu0  ;;  %v610_v28 = vpop.f32.mrf.mxu1 }
  0xf2   : > { %384 = vst.msk [vmem:[#allocation2] sm:$0xff] %vm197_vm0, %v375_v25  ;;  %388 = vst.msk [vmem:[#allocation2 + $0x20] sm:$0xff] %vm197_vm0, %v379_v26  ;;  %v378_v31 = vadd.f32 %v606_v27, %v209_v23  ;;  %v382_v32 = vadd.f32 %v610_v28, %v213_v24 }
  0xf3   : > { %v347_v33 = vpop.f32.mrf.mxu0  ;;  %v363_v34 = vpop.f32.mrf.mxu1 }
  0xf4   : > { %387 = vst.msk [vmem:[#allocation2 + $0x18] sm:$0xff] %vm197_vm0, %v378_v31  ;;  %391 = vst.msk [vmem:[#allocation2 + $0x38] sm:$0xff] %vm197_vm0, %v382_v32  ;;  %v376_v35 = vadd.f32 %v347_v33, %v207_v29  ;;  %v380_v36 = vadd.f32 %v363_v34, %v211_v30 }
  0xf6   : > { %385 = vst.msk [vmem:[#allocation2 + $0x8] sm:$0xff] %vm197_vm0, %v376_v35  ;;  %389 = vst.msk [vmem:[#allocation2 + $0x28] sm:$0xff] %vm197_vm0, %v380_v36 }
  0xf7   : > { %v397_v37 = vld [vmem:[#allocation2 + $0x10] sm:$0xff] }
  0xf8   : > { %v401_v38 = vld [vmem:[#allocation2 + $0x30] sm:$0xff]  ;;  %v405_v39 = vmax.f32 %v397_v37, 0.0 }
  0xf9   : > { %v409_v40 = vmax.f32 %v401_v38, 0.0  ;;  %v395_v41 = vld [vmem:[#allocation2] sm:$0xff] }
  0xfa   : > { %v399_v42 = vld [vmem:[#allocation2 + $0x20] sm:$0xff]  ;;  %v569_v43 = vpack.c.bf16 %v405_v39, %v405_v39  ;;  %v403_v45 = vmax.f32 %v395_v41, 0.0 }
  0xfb   : > { %v573_v44 = vpack.c.bf16 %v409_v40, %v409_v40  ;;  %v407_v46 = vmax.f32 %v399_v42, 0.0  ;;  %v398_v47 = vld [vmem:[#allocation2 + $0x18] sm:$0xff] }
  0xfc   : > { %v402_v48 = vld [vmem:[#allocation2 + $0x38] sm:$0xff]  ;;  %446 = vst.msk [vmem:[%s190_s8 + $0x8] sm:$0xf] %vm443_vm1, %v569_v43  ;;  %v567_v49 = vpack.c.bf16 %v403_v45, %v403_v45  ;;  %v406_v51 = vmax.f32 %v398_v47, 0.0 }
  0xfd   : > { %450 = vst.msk [vmem:[%s190_s8 + $0x18] sm:$0xf] %vm443_vm1, %v573_v44  ;;  %v571_v50 = vpack.c.bf16 %v407_v46, %v407_v46  ;;  %v410_v52 = vmax.f32 %v402_v48, 0.0  ;;  %v396_v53 = vld [vmem:[#allocation2 + $0x8] sm:$0xff] }
  0xfe   : > { %v400_v54 = vld [vmem:[#allocation2 + $0x28] sm:$0xff]  ;;  %444 = vst.msk [vmem:[%s190_s8] sm:$0xf] %vm443_vm1, %v567_v49  ;;  %v570_v55 = vpack.c.bf16 %v406_v51, %v406_v51  ;;  %v404_v57 = vmax.f32 %v396_v53, 0.0 }
  0xff   : > { %448 = vst.msk [vmem:[%s190_s8 + $0x10] sm:$0xf] %vm443_vm1, %v571_v50  ;;  %v574_v56 = vpack.c.bf16 %v410_v52, %v410_v52  ;;  %v408_v58 = vmax.f32 %v400_v54, 0.0 }
 0x100   : > { %447 = vst.msk [vmem:[%s190_s8 + $0xc] sm:$0xf] %vm443_vm1, %v570_v55  ;;  %v568_v59 = vpack.c.bf16 %v404_v57, %v404_v57 }
 0x101   : > { %451 = vst.msk [vmem:[%s190_s8 + $0x1c] sm:$0xf] %vm443_vm1, %v574_v56  ;;  %v572_v60 = vpack.c.bf16 %v408_v58, %v408_v58 }
 0x102   : > { %445 = vst.msk [vmem:[%s190_s8 + $0x4] sm:$0xf] %vm443_vm1, %v568_v59 }
 0x103   : > { %449 = vst.msk [vmem:[%s190_s8 + $0x14] sm:$0xf] %vm443_vm1, %v572_v60 }
 0x104 PF: > { %s12_s11 = sadd.s32 1, %s686_s11   ;;  %s801_s9 = smov %s682_s10 }
 0x105   : > { %p9_p5 = scmp.ge.s32.totalorder %s12_s11, 4   ;;  %s802_s10 = smov %s804_s12 }
 0x107   :  { %11 = sbr.rel (!%p9_p5) target bundleno = 2 (0x2), region = 69 }

</bundles_post_ra>
